<compile_context>
chip_gen: v5e
topology: v5e:2x2
jax: 0.10.0
libtpu: 0.0.40
codegen_flags: <defaults>
</compile_context>

<pallas_src>
import functools

import jax
import jax.numpy as jnp
from jax.experimental import pallas as pl
from jax.experimental.pallas import tpu as pltpu

LANE = 128
# Elements of `predictions` per grid step (~2 MiB f32 block): large enough to
# amortize the ~0.35 us per-step overhead, small enough (double-buffered) to sit
# well inside v5e's 16 MiB scoped-VMEM default and v7x's 64 MiB physical VMEM.
MAX_BLOCK_ELEMS = 512 * 1024


def _fold_lanes(x):
    """(C, W) -> (C, LANE) by tree-adding 128-wide lane chunks.

    W is a power-of-two multiple of LANE, so every slice is vreg-aligned and the
    fold lowers to pure VPU adds (no cross-lane XLU work in the hot loop).
    """
    while x.shape[-1] > LANE:
        half = x.shape[-1] // 2
        x = x[:, :half] + x[:, half:]
    return x


def _dice_sums_kernel(pred_ref, tgt_ref, inter_ref, union_ref,
                      inter_acc, union_acc, *, spatial_size, ts, n_half_tiles):
    """Grid = (B, halves, spatial_tiles); innermost axis is the sequential reduction."""
    h = pl.program_id(1)
    t = pl.program_id(2)

    @pl.when(t == 0)
    def _():
        inter_acc[...] = jnp.zeros_like(inter_acc)
        union_acc[...] = jnp.zeros_like(union_acc)

    num_classes = inter_acc.shape[0]

    pred = pred_ref[0]                              # (C, TS), native dtype
    tgt = tgt_ref[0]                                # (1, TS) int32; -1 == not-land sentinel

    # Logical start of this tile in the flattened spatial axis; lanes past the
    # true extent (ragged last tile / clamped duplicate tile) are invalidated,
    # so no wrapper-side padding (no extra HBM copy of predictions) is needed.
    start = (h * n_half_tiles + t) * ts
    pos = jax.lax.broadcasted_iota(jnp.int32, (1, ts), 1) + start
    tgt_eff = jnp.where(pos < spatial_size, tgt, jnp.int32(-1))

    # Single explicit broadcast of the target tile, reused for both the land
    # mask test and the one-hot compare (JAX does not CSE broadcasts).
    tgt_c = jnp.broadcast_to(tgt_eff, (num_classes, ts))
    class_ids = jax.lax.broadcasted_iota(jnp.int32, (num_classes, ts), 0)

    # Selects (not multiplies) so out-of-bounds garbage can never propagate NaN.
    pred_m = jnp.where(tgt_c >= 0, pred.astype(jnp.float32), jnp.float32(0.0))
    onehot_m = jnp.where(class_ids == tgt_c, jnp.float32(1.0), jnp.float32(0.0))

    # Fold each (C, TS) product down to (C, LANE) before touching the
    # accumulators: accumulator vld/vst traffic is O(C*128) per step.
    inter_acc[...] += _fold_lanes(pred_m * onehot_m)
    union_acc[...] += _fold_lanes(pred_m + onehot_m)

    @pl.when(t == pl.num_programs(2) - 1)
    def _():
        inter_ref[0, 0] = inter_acc[...]
        union_ref[0, 0] = union_acc[...]


def dice_loss(predictions, targets, land_mask, is_label, smooth=1e-6):
    """1 - mean(dice[is_label]) with land-masked per-class dice (matches the PyTorch module)."""
    B, C, H, W = predictions.shape
    S = H * W

    # Free reshape; predictions stream in their native dtype (bf16 inputs halve
    # the dominant HBM stream; the cast to f32 happens in-kernel).
    pred3 = predictions.reshape(B, C, S)

    # Encode the land mask into the targets as a sentinel class (-1): the kernel
    # then streams only pred + int32 targets. Exact for the usual {0,1} mask.
    # TODO(synk): if land_mask can be fractional, stream it separately (bf16).
    tgt3 = jnp.where(land_mask != 0, targets.astype(jnp.int32),
                     jnp.int32(-1)).reshape(B, 1, S)

    # Lane-dense spatial tile: power-of-two multiple of 128 (keeps the in-kernel
    # lane-chunk tree fold vreg-aligned), capped by MAX_BLOCK_ELEMS.
    ts_cap = max(LANE, ((MAX_BLOCK_ELEMS // max(C, 1)) // LANE) * LANE)
    TS = LANE
    while TS * 2 <= ts_cap and TS < S:
        TS *= 2

    n_tiles = pl.cdiv(S, TS)
    # Split the spatial reduction in two so both v7x TensorCores have work even
    # when B is 1/odd (harmless on single-TC v5e/v6e).
    halves = 2 if n_tiles >= 2 else 1
    n_half = pl.cdiv(n_tiles, halves)

    def _in_idx(b, h, t):
        # Clamp so a duplicated trailing tile of the second half stays in
        # bounds; its contribution is zeroed in-kernel by the positional mask.
        return (b, 0, jnp.minimum(h * n_half + t, n_tiles - 1))

    kernel = functools.partial(_dice_sums_kernel, spatial_size=S, ts=TS,
                               n_half_tiles=n_half)

    inter, union = pl.pallas_call(
        kernel,
        out_shape=(
            jax.ShapeDtypeStruct((B, halves, C, LANE), jnp.float32),
            jax.ShapeDtypeStruct((B, halves, C, LANE), jnp.float32),
        ),
        grid_spec=pltpu.PrefetchScalarGridSpec(
            num_scalar_prefetch=0,
            grid=(B, halves, n_half),
            in_specs=[
                pl.BlockSpec((1, C, TS), _in_idx),
                pl.BlockSpec((1, 1, TS), _in_idx),
            ],
            out_specs=(
                pl.BlockSpec((1, 1, C, LANE), lambda b, h, t: (b, h, 0, 0)),
                pl.BlockSpec((1, 1, C, LANE), lambda b, h, t: (b, h, 0, 0)),
            ),
            scratch_shapes=[
                pltpu.VMEM((C, LANE), jnp.float32),   # intersection accumulator
                pltpu.VMEM((C, LANE), jnp.float32),   # union accumulator (pred_sum + onehot_sum)
            ],
        ),
        compiler_params=pltpu.CompilerParams(
            dimension_semantics=("parallel", "parallel", "arbitrary"),
            vmem_limit_bytes=32 * 1024 * 1024,
        ),
    )(pred3, tgt3)

    intersection = jnp.sum(inter, axis=(1, 3))                # (B, C)
    union_sum = jnp.sum(union, axis=(1, 3))                   # (B, C)
    dice = (2.0 * intersection + smooth) / (union_sum + smooth)

    # dice[is_label] has a data-dependent shape; equivalent masked mean in plain
    # JAX (NaN for an empty selection, same as PyTorch's mean of 0 elements).
    sel = jnp.broadcast_to(jnp.asarray(is_label, jnp.bool_), dice.shape).astype(jnp.float32)
    return 1.0 - jnp.sum(dice * sel) / jnp.sum(sel)


def _dice_loss_ref(predictions, targets, land_mask, is_label, smooth=1e-6):
    """Plain-JAX reference matching the PyTorch forward."""
    C = predictions.shape[1]
    lm = land_mask[:, None].astype(jnp.float32)
    p = predictions.astype(jnp.float32) * lm
    oh = jax.nn.one_hot(targets, C, dtype=jnp.float32).transpose(0, 3, 1, 2) * lm
    inter = jnp.sum(p * oh, axis=(2, 3))
    union = jnp.sum(p, axis=(2, 3)) + jnp.sum(oh, axis=(2, 3))
    dice = (2.0 * inter + smooth) / (union + smooth)
    sel = jnp.broadcast_to(jnp.asarray(is_label, jnp.bool_), dice.shape).astype(jnp.float32)
    return 1.0 - jnp.sum(dice * sel) / jnp.sum(sel)


if __name__ == "__main__":
    key = jax.random.PRNGKey(0)
    kp, kt, km, kl = jax.random.split(key, 4)
    B, C, H, W = 2, 4, 16, 16

    predictions = jax.nn.softmax(
        jax.random.normal(kp, (B, C, H, W), dtype=jnp.float32), axis=1)
    targets = jax.random.randint(kt, (B, H, W), 0, C, dtype=jnp.int32)
    land_mask = jax.random.bernoulli(km, 0.7, (B, H, W)).astype(jnp.float32)
    is_label = jax.random.bernoulli(kl, 0.5, (B, C))
    is_label = is_label.at[0, 0].set(True)   # guarantee a non-empty selection

    loss = dice_loss(predictions, targets, land_mask, is_label, smooth=1e-6)
    loss = jax.block_until_ready(loss)

    ref = _dice_loss_ref(predictions, targets, land_mask, is_label, smooth=1e-6)
    assert jnp.allclose(loss, ref, rtol=1e-5, atol=1e-5), (loss, ref)

    print("KERNEL_OK")
</pallas_src>

<mosaic_0001>
module attributes {stable_mosaic.version = 11 : i64} {
  func.func @_dice_sums_kernel(%arg0: i32, %arg1: i32, %arg2: i32, %arg3: memref<1x4x256xf32, #tpu.memory_space<vmem>>, %arg4: memref<1x1x256xi32, #tpu.memory_space<vmem>>, %arg5: memref<1x1x4x128xf32, #tpu.memory_space<vmem>>, %arg6: memref<1x1x4x128xf32, #tpu.memory_space<vmem>>, %arg7: memref<4x128xf32, #tpu.memory_space<vmem>>, %arg8: memref<4x128xf32, #tpu.memory_space<vmem>>) attributes {dimension_semantics = [#tpu.dimension_semantics<parallel>, #tpu.dimension_semantics<parallel>, #tpu.dimension_semantics<arbitrary>], iteration_bounds = array<i64: 2, 1, 1>, scalar_prefetch = 0 : i64, scratch_operands = 2 : i64, tpu.core_type = #tpu.core_type<tc>, window_params = [{transform_indices = @transform_0, window_bounds = array<i64: 1, 4, 256>}, {transform_indices = @transform_1, window_bounds = array<i64: 1, 1, 256>}, {transform_indices = @transform_2, window_bounds = array<i64: 1, 1, 4, 128>}, {transform_indices = @transform_3, window_bounds = array<i64: 1, 1, 4, 128>}]} {
    %c0_i32 = arith.constant 0 : i32
    %0 = arith.cmpi eq, %arg2, %c0_i32 : i32
    %1 = arith.extui %0 : i1 to i32
    %c0_i32_0 = arith.constant 0 : i32
    %2 = arith.cmpi ne, %1, %c0_i32_0 : i32
    scf.if %2 {
      %cst_20 = arith.constant 0.000000e+00 : f32
      %45 = vector.broadcast %cst_20 : f32 to vector<4x128xf32>
      %c0_21 = arith.constant 0 : index
      %c0_22 = arith.constant 0 : index
      %46 = vector.load %arg7[%c0_21, %c0_22] : memref<4x128xf32, #tpu.memory_space<vmem>>, vector<4x128xf32>
      tpu.vector_store %arg7[%c0_21, %c0_22], %45 {strides = array<i32>} : memref<4x128xf32, #tpu.memory_space<vmem>>, vector<4x128xf32>,
      %cst_23 = arith.constant 0.000000e+00 : f32
      %47 = vector.broadcast %cst_23 : f32 to vector<4x128xf32>
      %c0_24 = arith.constant 0 : index
      %c0_25 = arith.constant 0 : index
      %48 = vector.load %arg8[%c0_24, %c0_25] : memref<4x128xf32, #tpu.memory_space<vmem>>, vector<4x128xf32>
      tpu.vector_store %arg8[%c0_24, %c0_25], %47 {strides = array<i32>} : memref<4x128xf32, #tpu.memory_space<vmem>>, vector<4x128xf32>,
    } else {
    }
    %c0 = arith.constant 0 : index
    %c0_1 = arith.constant 0 : index
    %c0_2 = arith.constant 0 : index
    %3 = vector.load %arg3[%c0, %c0_1, %c0_2] : memref<1x4x256xf32, #tpu.memory_space<vmem>>, vector<1x4x256xf32>
    %4 = vector.shape_cast %3 : vector<1x4x256xf32> to vector<4x256xf32>
    %c0_3 = arith.constant 0 : index
    %c0_4 = arith.constant 0 : index
    %c0_5 = arith.constant 0 : index
    %5 = vector.load %arg4[%c0_3, %c0_4, %c0_5] : memref<1x1x256xi32, #tpu.memory_space<vmem>>, vector<1x1x256xi32>
    %6 = vector.shape_cast %5 : vector<1x1x256xi32> to vector<1x256xi32>
    %c1_i32 = arith.constant 1 : i32
    %7 = arith.muli %arg1, %c1_i32 : i32
    %8 = arith.addi %7, %arg2 : i32
    %c256_i32 = arith.constant 256 : i32
    %9 = arith.muli %8, %c256_i32 : i32
    %10 = tpu.iota {dimensions = array<i32: 1>} : vector<1x256xi32>
    %11 = vector.broadcast %9 : i32 to vector<1x256xi32>
    %12 = arith.addi %10, %11 : vector<1x256xi32>
    %c256_i32_6 = arith.constant 256 : i32
    %13 = vector.broadcast %c256_i32_6 : i32 to vector<1x256xi32>
    %14 = arith.cmpi slt, %12, %13 : vector<1x256xi32>
    %c-1_i32 = arith.constant -1 : i32
    %15 = vector.broadcast %c-1_i32 : i32 to vector<1x256xi32>
    %16 = arith.select %14, %6, %15 : vector<1x256xi1>, vector<1x256xi32>
    %17 = vector.shape_cast %16 : vector<1x256xi32> to vector<1x256xi32>
    %18 = vector.broadcast %17 : vector<1x256xi32> to vector<4x256xi32>
    %19 = tpu.iota {dimensions = array<i32: 0>} : vector<4x256xi32>
    %c0_i32_7 = arith.constant 0 : i32
    %20 = vector.broadcast %c0_i32_7 : i32 to vector<4x256xi32>
    %21 = arith.cmpi sge, %18, %20 : vector<4x256xi32>
    %cst = arith.constant 0.000000e+00 : f32
    %22 = vector.broadcast %cst : f32 to vector<4x256xf32>
    %23 = arith.select %21, %4, %22 : vector<4x256xi1>, vector<4x256xf32>
    %24 = arith.cmpi eq, %19, %18 : vector<4x256xi32>
    %cst_8 = arith.constant 1.000000e+00 : f32
    %cst_9 = arith.constant 0.000000e+00 : f32
    %25 = vector.broadcast %cst_8 : f32 to vector<4x256xf32>
    %26 = vector.broadcast %cst_9 : f32 to vector<4x256xf32>
    %27 = arith.select %24, %25, %26 : vector<4x256xi1>, vector<4x256xf32>
    %c0_10 = arith.constant 0 : index
    %c0_11 = arith.constant 0 : index
    %28 = vector.load %arg7[%c0_10, %c0_11] : memref<4x128xf32, #tpu.memory_space<vmem>>, vector<4x128xf32>
    %29 = arith.mulf %23, %27 : vector<4x256xf32>
    %30 = vector.extract_strided_slice %29 {offsets = [0, 0], sizes = [4, 128], strides = [1, 1]} : vector<4x256xf32> to vector<4x128xf32>
    %31 = vector.extract_strided_slice %29 {offsets = [0, 128], sizes = [4, 128], strides = [1, 1]} : vector<4x256xf32> to vector<4x128xf32>
    %32 = arith.addf %30, %31 : vector<4x128xf32>
    %33 = arith.addf %28, %32 : vector<4x128xf32>
    %c0_12 = arith.constant 0 : index
    %c0_13 = arith.constant 0 : index
    %34 = vector.load %arg7[%c0_12, %c0_13] : memref<4x128xf32, #tpu.memory_space<vmem>>, vector<4x128xf32>
    tpu.vector_store %arg7[%c0_12, %c0_13], %33 {strides = array<i32>} : memref<4x128xf32, #tpu.memory_space<vmem>>, vector<4x128xf32>,
    %c0_14 = arith.constant 0 : index
    %c0_15 = arith.constant 0 : index
    %35 = vector.load %arg8[%c0_14, %c0_15] : memref<4x128xf32, #tpu.memory_space<vmem>>, vector<4x128xf32>
    %36 = arith.addf %23, %27 : vector<4x256xf32>
    %37 = vector.extract_strided_slice %36 {offsets = [0, 0], sizes = [4, 128], strides = [1, 1]} : vector<4x256xf32> to vector<4x128xf32>
    %38 = vector.extract_strided_slice %36 {offsets = [0, 128], sizes = [4, 128], strides = [1, 1]} : vector<4x256xf32> to vector<4x128xf32>
    %39 = arith.addf %37, %38 : vector<4x128xf32>
    %40 = arith.addf %35, %39 : vector<4x128xf32>
    %c0_16 = arith.constant 0 : index
    %c0_17 = arith.constant 0 : index
    %41 = vector.load %arg8[%c0_16, %c0_17] : memref<4x128xf32, #tpu.memory_space<vmem>>, vector<4x128xf32>
    tpu.vector_store %arg8[%c0_16, %c0_17], %40 {strides = array<i32>} : memref<4x128xf32, #tpu.memory_space<vmem>>, vector<4x128xf32>,
    %c0_i32_18 = arith.constant 0 : i32
    %42 = arith.cmpi eq, %arg2, %c0_i32_18 : i32
    %43 = arith.extui %42 : i1 to i32
    %c0_i32_19 = arith.constant 0 : i32
    %44 = arith.cmpi ne, %43, %c0_i32_19 : i32
    scf.if %44 {
      %c0_20 = arith.constant 0 : index
      %c0_21 = arith.constant 0 : index
      %45 = vector.load %arg7[%c0_20, %c0_21] : memref<4x128xf32, #tpu.memory_space<vmem>>, vector<4x128xf32>
      %c0_22 = arith.constant 0 : index
      %c0_23 = arith.constant 0 : index
      %c0_24 = arith.constant 0 : index
      %c0_25 = arith.constant 0 : index
      %46 = vector.load %arg5[%c0_22, %c0_23, %c0_24, %c0_25] : memref<1x1x4x128xf32, #tpu.memory_space<vmem>>, vector<1x1x4x128xf32>
      %47 = vector.shape_cast %46 : vector<1x1x4x128xf32> to vector<4x128xf32>
      %48 = vector.shape_cast %45 : vector<4x128xf32> to vector<1x1x4x128xf32>
      tpu.vector_store %arg5[%c0_22, %c0_23, %c0_24, %c0_25], %48 {strides = array<i32>} : memref<1x1x4x128xf32, #tpu.memory_space<vmem>>, vector<1x1x4x128xf32>,
      %c0_26 = arith.constant 0 : index
      %c0_27 = arith.constant 0 : index
      %49 = vector.load %arg8[%c0_26, %c0_27] : memref<4x128xf32, #tpu.memory_space<vmem>>, vector<4x128xf32>
      %c0_28 = arith.constant 0 : index
      %c0_29 = arith.constant 0 : index
      %c0_30 = arith.constant 0 : index
      %c0_31 = arith.constant 0 : index
      %50 = vector.load %arg6[%c0_28, %c0_29, %c0_30, %c0_31] : memref<1x1x4x128xf32, #tpu.memory_space<vmem>>, vector<1x1x4x128xf32>
      %51 = vector.shape_cast %50 : vector<1x1x4x128xf32> to vector<4x128xf32>
      %52 = vector.shape_cast %49 : vector<4x128xf32> to vector<1x1x4x128xf32>
      tpu.vector_store %arg6[%c0_28, %c0_29, %c0_30, %c0_31], %52 {strides = array<i32>} : memref<1x1x4x128xf32, #tpu.memory_space<vmem>>, vector<1x1x4x128xf32>,
    } else {
    }
    return
  }
  func.func @transform_0(%arg0: i32, %arg1: i32, %arg2: i32) -> (i32, i32, i32) {
    %c1_i32 = arith.constant 1 : i32
    %0 = arith.muli %arg1, %c1_i32 : i32
    %1 = arith.addi %0, %arg2 : i32
    %c0_i32 = arith.constant 0 : i32
    %2 = arith.minsi %1, %c0_i32 : i32
    %c0_i32_0 = arith.constant 0 : i32
    %c0_i32_1 = arith.constant 0 : i32
    return %arg0, %c0_i32_0, %2 : i32, i32, i32
  }
  func.func @transform_1(%arg0: i32, %arg1: i32, %arg2: i32) -> (i32, i32, i32) {
    %c1_i32 = arith.constant 1 : i32
    %0 = arith.muli %arg1, %c1_i32 : i32
    %1 = arith.addi %0, %arg2 : i32
    %c0_i32 = arith.constant 0 : i32
    %2 = arith.minsi %1, %c0_i32 : i32
    %c0_i32_0 = arith.constant 0 : i32
    %c0_i32_1 = arith.constant 0 : i32
    return %arg0, %c0_i32_0, %2 : i32, i32, i32
  }
  func.func @transform_2(%arg0: i32, %arg1: i32, %arg2: i32) -> (i32, i32, i32, i32) {
    %c0_i32 = arith.constant 0 : i32
    %c0_i32_0 = arith.constant 0 : i32
    %c0_i32_1 = arith.constant 0 : i32
    return %arg0, %arg1, %c0_i32, %c0_i32_0 : i32, i32, i32, i32
  }
  func.func @transform_3(%arg0: i32, %arg1: i32, %arg2: i32) -> (i32, i32, i32, i32) {
    %c0_i32 = arith.constant 0 : i32
    %c0_i32_0 = arith.constant 0 : i32
    %c0_i32_1 = arith.constant 0 : i32
    return %arg0, %arg1, %c0_i32, %c0_i32_0 : i32, i32, i32, i32
  }
}

</mosaic_0001>

<bundles_post_ra>
// kernel: tpu_custom_call.1
= control target key start
LH: loop header
LB: loop body
LE: loop exit
PB: predicated region body
PF: predicated region fallthrough
CT: control target
= control target key end

     0   :  { %9 = vsyncpa [#allocation5], 0  ;;  %s991_s0 = inlined_call_operand.hbm [shape: f32[2,4,256], index: 0, kind: input, shape index: {}]   ;;  %s992_s1 = inlined_call_operand.hbm [shape: s32[2,1,256], index: 1, kind: input, shape index: {}]   ;;  %s993_s2 = inlined_call_operand.hbm [shape: f32[2,1,4,128], index: 2, kind: output, shape index: {0}]   ;;  %s994_s3 = inlined_call_operand.hbm [shape: f32[2,1,4,128], index: 3, kind: output, shape index: {1}]  }
   0x1   :  { %11 = vsyncpa [#allocation5 + $0x1], 0 }
   0x2   :  { %12 = vsyncpa [#allocation8], 0 }
   0x3   :  { %14 = vsyncpa [#allocation8 + $0x1], 0 }
   0x4   :  { %15 = vsyncpa [#allocation6], 0 }
   0x5   :  { %17 = vsyncpa [#allocation6 + $0x1], 0 }
   0x6   :  { %18 = vsyncpa [#allocation11], 0 }
   0x7   :  { %20 = vsyncpa [#allocation11 + $0x1], 0  ;;  %s831_s12 = smov 0   ;;  %s833_s13 = smov 0  }
   0x8   :  { %s835_s14 = smov 0   ;;  %s837_s15 = smov 0  }
   0x9   :  { %s839_s16 = smov 0   ;;  %s841_s17 = smov 0  }
   0xa LB: > { %s536_s18 = sadd.s32 4294967295, %s808_s17   ;;  %s537_s19 = sadd.s32 4294967294, %s808_s17   ;;  %s808_s17 = sphi %s841_s17, %s26_s17   ;;  %s804_s16 = sphi %s839_s16, %s1004_s16   ;;  %s800_s15 = sphi %s837_s15, %s1003_s15   ;;  %s796_s14 = sphi %s835_s14, %s1002_s14   ;;  %s792_s13 = sphi %s833_s13, %s1001_s13   ;;  %s788_s12 = sphi %s831_s12, %s1000_s12  }
   0xb   : > { %s45_s20 = sadd.s32 1, %s804_s16  ;;  %s60_s21 = sadd.s32 1, %s796_s14 }
   0xc   : > { %p47_p0 = scmp.ge.s32.totalorder %s45_s20, 2  ;;  %p67_p1 = scmp.ne.s32.totalorder %s796_s14, %s792_s13 }
   0xd   : > { %p68_p2 = scmp.eq.s32.totalorder %s808_s17, 0  ;;  %p73_p3 = scmp.ne.s32.totalorder %s792_s13, %s788_s12 }
   0xe   : > { %s1006_s20 = smov (%p47_p0, %s45_s20), 0  ;;  %p74_p5 = scmp.eq.s32.totalorder %s536_s18, 0 }
   0xf   : > { %p872_p4 = por %p68_p2, %p67_p1  ;;  %s55_s23 = ssub.s32 %s804_s16, %s1006_s20 }
  0x10   : > { %p133_p6 = scmp.eq.s32.totalorder %s536_s18, 1  ;;  %p58_p7 = scmp.eq.s32.totalorder %s55_s23, 0 }
  0x11   : > { %p878_p8 = por %p74_p5, %p73_p3  ;;  %p139_p10 = scmp.eq.s32.totalorder %s537_s19, 1 }
  0x12   : > { %p882_p9 = por %p133_p6, %p67_p1  ;;  %p539_p12 = scmp.ge.s32.totalorder %s808_s17, 2 }
  0x13   : > { %s887_s26 = scalar_select %p58_p7, %s796_s14, %s60_s21  }
  0x14   : > { %p889_p11 = por %p139_p10, %p73_p3  ;;  %p579_p13 = scmp.lt.s32.totalorder %s808_s17, 2 }
  0x15   : > { %s187_s28 = sand.u32 1, %s796_s14   ;;  %s556_s30 = sshll.u32 %s804_s16, 3 }
  0x16   : > { %s540_s29 = sshll.u32 %s187_s28, 3  ;;  %s201_s6 = scalar_lea.hbm %s991_s0, %s556_s30 }
  0x17   : > { %s191_s7 = scalar_lea.vmem [#allocation4], %s540_s29  ;;  %s203_s9 = sshll.u32 %s201_s6, 4  ;;  %s204_s9 = int_to_ptr.hbm [resolvable:$true] %s203_s9 }
  0x18   : > { %s205_s8 = sshll.u32 %s191_s7, 4  ;;  %p902_p0 = pnand %p579_p13, %p872_p4  ;;  %s206_s8 = int_to_ptr.vmem [resolvable:$true] %s205_s8 }
  0x19   : > { %p545_p1 = scmp.ge.s32.totalorder %s808_s17, 1  ;;  %p234_p2 = scmp.lt.s32.totalorder %s808_s17, 3 }
  0x1a   : > { %s188_s11 = scalar_lea.sflag [#allocation5], %s187_s28  ;;  %s543_s18 = sshll.u32 %s187_s28, 1 }
  0x1b   : > { %568 = dma.hbm_to_vmem [thread:$0]  (!%p902_p0), %s204_s9, 128, %s206_s8, %s188_s11  }
  0x1c   : > { %p235_p3 = pnand %p545_p1, %p234_p2  ;;  %s544_s19 = sshll.u32 %s804_s16, 1 }
  0x1d   : > { %s225_s29 = scalar_lea.hbm %s992_s1, %s544_s19  ;;  %s216_s30 = scalar_lea.vmem [#allocation7], %s543_s18 }
  0x1e   : > { %s229_s22 = sshll.u32 %s216_s30, 4  ;;  %s227_s4 = sshll.u32 %s225_s29, 4  ;;  %s230_s22 = int_to_ptr.vmem [resolvable:$true] %s229_s22  ;;  %s228_s4 = int_to_ptr.hbm [resolvable:$true] %s227_s4 }
  0x1f   : > { %s213_s5 = scalar_lea.sflag [#allocation8], %s187_s28  ;;  %238 = sbr.rel (%p235_p3) target bundleno = 82 (0x52), region = 28 }
  0x20   : > { %571 = dma.hbm_to_vmem [thread:$0]  (!%p902_p0), %s228_s4, 32, %s230_s22, %s213_s5  }
  0x21   : > { %s917_s6 = sand.u32 (!%p235_p3), 1, %s792_s13  }
  0x22   : > { %s546_s7 = sshll.u32 (!%p235_p3), %s917_s6, 3  ;;  %s241_s8 = scalar_lea.sflag (!%p235_p3), [#allocation5], %s917_s6 }
  0x23   : > { %s244_s9 = scalar_lea.vmem (!%p235_p3), [#allocation4], %s546_s7 }
  0x24   : > { %771 = dma.done.wait (%p878_p8), %s241_s8, 128  }
  0x25   : > { %773 = vsyncadd (%p878_p8), %s241_s8, 4294967168  ;;  %s547_s28 = sshll.u32 %s917_s6, 1  ;;  %s251_s10 = scalar_lea.sflag [#allocation8], %s917_s6 }
  0x26   : > { %s254_s11 = scalar_lea.vmem [#allocation7], %s547_s28 }
  0x27   : > { %775 = dma.done.wait (%p878_p8), %s251_s10, 32  }
  0x28   : > { %777 = vsyncadd (%p878_p8), %s251_s10, 4294967264  ;;  %v810_v0 = vmov 0.0   ;;  %v320_v1 = vlaneseq  ;;  %v302_v2 = vld [vmem:[%s244_s9] sm:$0xff]  ;;  %v303_v3 = vld [vmem:[%s254_s11] sm:$0x3]  ;;  %s548_s24 = sshll.u32 %s917_s6, 2 }
  0x29   : > { %300 = vst [vmem:[#allocation2] sm:$0xf] %v810_v0  ;;  %v314_v4 = vperm.slane %v303_v3, 0  ;;  %v315_v5 = vperm.slane %v303_v3, 1  ;;  %s552_s18 = sshll.u32 %s800_s15, 2  ;;  %s280_s4 = scalar_lea.vmem [#allocation9], %s548_s24 }
  0x2a   : > { %301 = vst [vmem:[#allocation3] sm:$0xf] %v810_v0  ;;  %v321_v6 = vshrl.u32 %v320_v1, 7  ;;  %s372_s23 = scalar_lea.hbm %s993_s2, %s552_s18  ;;  %s387_s22 = scalar_lea.hbm %s994_s3, %s552_s18 }
  0x2b   : > { %325 = vst [vmem:[#allocation1] ss:$2 sm:$0xff] %v302_v2  ;;  %v318_v7 = vperm.slane %v314_v4, 0  ;;  %v319_v8 = vperm.slane %v315_v5, 0  ;;  %s374_s5 = sshll.u32 %s280_s4, 4  ;;  %s287_s7 = scalar_lea.vmem [#allocation10], %s548_s24  ;;  %s375_s5 = int_to_ptr.vmem [resolvable:$true] %s374_s5 }
  0x2c   : > { %s389_s8 = sshll.u32 %s287_s7, 4  ;;  %s376_s9 = sshll.u32 %s372_s23, 4  ;;  %s939_s8 = int_to_ptr.vmem [resolvable:$true] %s389_s8  ;;  %s377_s9 = int_to_ptr.hbm [resolvable:$true] %s376_s9 }
  0x2d   : > { %vm332_vm0 = vcmp.eq.s32.totalorder %v321_v6, %v318_v7  ;;  %vm333_vm1 = vcmp.eq.s32.totalorder %v321_v6, %v319_v8  ;;  %vm322_vm2 = vcmp.ge.s32.totalorder %v318_v7, 0  ;;  %vm323_vm3 = vcmp.ge.s32.totalorder %v319_v8, 0  ;;  %s391_s15 = sshll.u32 %s387_s22, 4  ;;  %s356_s28 = scalar_lea.sflag [#allocation6], %s917_s6  ;;  %s941_s15 = int_to_ptr.hbm [resolvable:$true] %s391_s15 }
  0x2e   : > { %v334_v9 = vsel %vm332_vm0, 1.0, %v810_v0  ;;  %v335_v10 = vsel %vm333_vm1, 1.0, %v810_v0  ;;  %s704_s10 = sshra.s32 %s377_s9, 4  ;;  %s710_s19 = scalar_lea.hbm %s993_s2, 8  ;;  %s705_s10 = int_to_ptr.hbm [resolvable:$true] %s704_s10 }
  0x2f   : > { %s706_s11 = scalar_lea.hbm %s705_s10, 4  ;;  %p711_p7 = scmp.lt.s32.totalorder %s705_s10, %s993_s2 }
  0x30   : > { %v336_v19 = vld [vmem:[#allocation2] sm:$0xf]  ;;  %p707_p4 = scmp.ne.s32.totalorder %s705_s10, %s706_s11  ;;  %p712_p8 = scmp.lt.s32.totalorder %s710_s19, %s706_s11 }
  0x31   : > { %v342_v20 = vld [vmem:[#allocation3] sm:$0xf] }
  0x32   : > { %v326_v11 = vld.sshfl [vmem:[#allocation1] sm:$0xff pattern:$0x75316420]  ;;  %v327_v12 = vld.sshfl [vmem:[#allocation1 + $0x8] sm:$0xff pattern:$0x75316420]  ;;  %p708_p5 = pnand %p707_p4, %p882_p9  ;;  %p713_p10 = por %p712_p8, %p711_p7 }
  0x33   : > { %v330_v13 = vsel %vm322_vm2, %v326_v11, 0.0  ;;  %v331_v14 = vsel %vm323_vm3, %v327_v12, 0.0 }
  0x34   : > { %v337_v15 = vmul.f32 %v334_v9, %v330_v13  ;;  %v338_v16 = vmul.f32 %v335_v10, %v331_v14  ;;  %v343_v17 = vadd.f32 %v334_v9, %v330_v13  ;;  %v344_v18 = vadd.f32 %v335_v10, %v331_v14  ;;  %p709_p6 = pneg %p708_p5 }
  0x36   : > { %v339_v21 = vadd.f32 %v338_v16, %v337_v15  ;;  %v345_v22 = vadd.f32 %v344_v18, %v343_v17  ;;  %p714_p13 = pnand %p713_p10, %p709_p6 }
  0x38   : > { %v340_v23 = vadd.f32 %v339_v21, %v336_v19  ;;  %v346_v24 = vadd.f32 %v345_v22, %v342_v20 }
  0x3a   : > { %341 = vst [vmem:[#allocation2] sm:$0xf] %v340_v23 }
  0x3b   : > { %347 = vst [vmem:[#allocation3] sm:$0xf] %v346_v24 }
  0x41   : > { %v351_v25 = vld [vmem:[#allocation2] sm:$0xf] }
  0x42   : > { %352 = vst [vmem:[%s280_s4] sm:$0xf] %v351_v25  ;;  %v353_v26 = vld [vmem:[#allocation3] sm:$0xf] }
  0x43   : > { %354 = vst [vmem:[%s287_s7] sm:$0xf] %v353_v26 }
  0x44   : > { %717 = shalt.err (!%p714_p13)
}
  0x45   : > { %561 = dma.vmem_to_hbm [thread:$0]  (%p882_p9), %s375_s5, 64, %s377_s9, %s356_s28  }
  0x46   : > { %s361_s29 = scalar_lea.sflag [#allocation11], %s917_s6  ;;  %s732_s30 = sshra.s32 %s941_s15, 4  ;;  %s733_s30 = int_to_ptr.hbm [resolvable:$true] %s732_s30 }
  0x47   : > { %s734_s22 = scalar_lea.hbm %s733_s30, 4  ;;  %s738_s10 = scalar_lea.hbm %s994_s3, 8 }
  0x48   : > { %p735_p0 = scmp.ne.s32.totalorder %s733_s30, %s734_s22  ;;  %p739_p3 = scmp.lt.s32.totalorder %s733_s30, %s994_s3 }
  0x49   : > { %p740_p4 = scmp.lt.s32.totalorder %s738_s10, %s734_s22 }
  0x4a   : > { %p736_p1 = pnand %p735_p0, %p882_p9 }
  0x4b   : > { %p741_p5 = por %p740_p4, %p739_p3 }
  0x4c   : > { %p737_p2 = pneg %p736_p1 }
  0x4e   : > { %p742_p6 = pnand %p741_p5, %p737_p2 }
  0x50   : > { %745 = shalt.err (!%p742_p6)
}
  0x51   : > { %562 = dma.vmem_to_hbm [thread:$0]  (%p882_p9), %s939_s8, 64, %s941_s15, %s361_s29  }
  0x52 PF: > { %s403_s6 = sand.u32 1, %s788_s12   ;;  %p573_p7 = pnand %p539_p12, %p889_p11 }
  0x53   : > { %s404_s5 = scalar_lea.sflag [#allocation6], %s403_s6 }
  0x54   : > { %p574_p8 = pneg %p573_p7 }
  0x56   : > { %779 = dma.done.wait (%p574_p8), %s404_s5, 64  }
  0x57   : > { %781 = vsyncadd (%p574_p8), %s404_s5, 4294967232  ;;  %s414_s9 = scalar_lea.sflag [#allocation11], %s403_s6 }
  0x58   : > { %783 = dma.done.wait (%p574_p8), %s414_s9, 64  }
  0x59   : > { %785 = vsyncadd (%p574_p8), %s414_s9, 4294967232  ;;  %s26_s17 = sadd.s32 1, %s808_s17   ;;  %s1000_s12 = smov %s792_s13 }
  0x5a   : > { %p23_p10 = scmp.ge.s32.totalorder %s26_s17, 4   ;;  %s1001_s13 = smov %s796_s14 }
  0x5b   : > { %s1002_s14 = smov %s887_s26  ;;  %s1003_s15 = smov %s804_s16 }
  0x5c   : > { %s1004_s16 = smov %s1006_s20  ;;  %25 = sbr.rel (!%p23_p10) target bundleno = 10 (0xa), region = 111 }
  0x61   :  { %420 = vsyncpa [#allocation5], 1 }
  0x62   :  { %422 = vsyncpa [#allocation5 + $0x1], 1 }
  0x63   :  { %423 = vsyncpa [#allocation8], 1 }
  0x64   :  { %425 = vsyncpa [#allocation8 + $0x1], 1 }
  0x65   :  { %426 = vsyncpa [#allocation6], 1 }
  0x66   :  { %428 = vsyncpa [#allocation6 + $0x1], 1 }
  0x67   :  { %429 = vsyncpa [#allocation11], 1 }
  0x68   :  { %431 = vsyncpa [#allocation11 + $0x1], 1 }

</bundles_post_ra>
